<compile_context>
chip_gen: v6e
topology: v6e:2x2x1
jax: 0.10.0
libtpu: 0.0.40
codegen_flags: <defaults>
</compile_context>

<pallas_src>
import numpy as np

import jax
import jax.numpy as jnp
from jax import lax
from jax.experimental import pallas as pl
from jax.experimental.pallas import tpu as pltpu


def _gather_onehot_kernel(ids_ref, table_ref, out_ref):
    """One grid step: gather block_rows*pack rows via one-hot MXU matmuls.

    ids_ref   : VMEM, (block_rows, pack) int32 position ids
    table_ref : VMEM, (max_len, d_model) embedding table (constant block)
    out_ref   : VMEM, (block_rows, pack * d_model) lane-dense output tile
    """
    ids = ids_ref[...]                       # (block_rows, pack) int32
    table = table_ref[...]                   # (max_len, d_model)
    block_rows, pack = ids.shape
    max_len, d_model = table.shape

    # Column iota shared by all pack segments.
    col_iota = lax.broadcasted_iota(jnp.int32, (block_rows, max_len), 1)

    # Static, tiny loop (pack <= 16): one MXU matmul per packed segment.
    for k in range(pack):
        idk = ids[:, k:k + 1]                               # (block_rows, 1)
        onehot = (idk == col_iota).astype(table.dtype)      # exact 0/1
        gathered = jnp.dot(onehot, table,
                           preferred_element_type=jnp.float32)
        out_ref[:, k * d_model:(k + 1) * d_model] = gathered.astype(out_ref.dtype)


def absolute_positional_encoding(position_ids: jax.Array,
                                 pe_table: jax.Array,
                                 block_s: int = 512) -> jax.Array:
    """position_ids: int array of any shape; pe_table: (max_len, d_model)."""
    ids_shape = position_ids.shape
    max_len, d_model = pe_table.shape
    total = int(np.prod(ids_shape)) if ids_shape else 1

    # Lane-dense packing factor for the output writeback.
    if d_model < 128 and 128 % d_model == 0:
        pack = 128 // d_model
    else:
        pack = 1
    row_unit = 8 * pack  # block_s must be a multiple of this (sublane constraint)

    # Effective block size: large (default 512 ids) but no larger than needed.
    padded_min = pl.cdiv(total, row_unit) * row_unit
    block_s_eff = max(row_unit, min(block_s, padded_min))
    block_s_eff = pl.cdiv(block_s_eff, row_unit) * row_unit
    padded = pl.cdiv(total, block_s_eff) * block_s_eff

    flat_ids = position_ids.reshape(total).astype(jnp.int32)
    if padded != total:
        # Padded tail ids = 0; their (valid) rows are sliced off afterwards.
        flat_ids = jnp.concatenate(
            [flat_ids, jnp.zeros((padded - total,), jnp.int32)])

    ids2d = flat_ids.reshape(padded // pack, pack)
    block_rows = block_s_eff // pack
    grid = (padded // block_s_eff,)

    out_packed = pl.pallas_call(
        _gather_onehot_kernel,
        out_shape=jax.ShapeDtypeStruct((padded // pack, pack * d_model),
                                       pe_table.dtype),
        grid=grid,
        in_specs=[
            # Per-step block of ids (last dim == full dim, so always legal).
            pl.BlockSpec((block_rows, pack), lambda i: (i, 0)),
            # Full embedding table, constant block index -> fetched once per core.
            pl.BlockSpec((max_len, d_model), lambda i: (0, 0)),
        ],
        out_specs=pl.BlockSpec((block_rows, pack * d_model), lambda i: (i, 0)),
        compiler_params=pltpu.CompilerParams(
            dimension_semantics=("parallel",),       # independent steps -> 2 TCs on v7x
            vmem_limit_bytes=48 * 1024 * 1024,       # explicit budget, safe on v5e/v6e/v7x
        ),
    )(ids2d, pe_table)

    # Row-major reinterpretation back to (total, d_model), drop the padding.
    out_flat = out_packed.reshape(padded, d_model)
    return out_flat[:total].reshape(*ids_shape, d_model)


if __name__ == "__main__":
    # Small shapes consistent with the module: batch=2, seq=8, max_len=16,
    # d_model=32.
    batch, seq = 2, 8
    max_len, d_model = 16, 32

    key = jax.random.PRNGKey(0)
    k_tab, k_ids = jax.random.split(key)

    # Deterministic parameter init: nn.Embedding default is N(0, 1).
    pe_table = jax.random.normal(k_tab, (max_len, d_model), dtype=jnp.float32)
    position_ids = jax.random.randint(k_ids, (batch, seq), 0, max_len,
                                      dtype=jnp.int32)

    out = absolute_positional_encoding(position_ids, pe_table)
    out = jax.block_until_ready(out)

    # Reference check (plain JAX gather).
    ref = pe_table[position_ids]
    assert out.shape == (batch, seq, d_model)
    assert jnp.allclose(out, ref), "mismatch vs reference gather"

    print("KERNEL_OK")
</pallas_src>

<mosaic_0001>
module attributes {stable_mosaic.version = 11 : i64} {
  func.func @_gather_onehot_kernel(%arg0: i32, %arg1: memref<8x4xi32, #tpu.memory_space<vmem>>, %arg2: memref<16x32xf32, #tpu.memory_space<vmem>>, %arg3: memref<8x128xf32, #tpu.memory_space<vmem>>) attributes {dimension_semantics = [#tpu.dimension_semantics<parallel>], iteration_bounds = array<i64: 1>, scalar_prefetch = 0 : i64, scratch_operands = 0 : i64, tpu.core_type = #tpu.core_type<tc>, window_params = [{transform_indices = @transform_0, window_bounds = array<i64: 8, 4>}, {pipeline_mode = #tpu.pipeline_mode<synchronous>, transform_indices = @transform_1, window_bounds = array<i64: 16, 32>}, {transform_indices = @transform_2, window_bounds = array<i64: 8, 128>}]} {
    %c0 = arith.constant 0 : index
    %c0_0 = arith.constant 0 : index
    %0 = vector.load %arg1[%c0, %c0_0] : memref<8x4xi32, #tpu.memory_space<vmem>>, vector<8x4xi32>
    %c0_1 = arith.constant 0 : index
    %c0_2 = arith.constant 0 : index
    %1 = vector.load %arg2[%c0_1, %c0_2] : memref<16x32xf32, #tpu.memory_space<vmem>>, vector<16x32xf32>
    %2 = tpu.iota {dimensions = array<i32: 1>} : vector<8x16xi32>
    %3 = vector.extract_strided_slice %0 {offsets = [0, 0], sizes = [8, 1], strides = [1, 1]} : vector<8x4xi32> to vector<8x1xi32>
    %4 = vector.broadcast %3 : vector<8x1xi32> to vector<8x16xi32>
    %5 = arith.cmpi eq, %4, %2 : vector<8x16xi32>
    %6 = arith.extui %5 : vector<8x16xi1> to vector<8x16xi32>
    %7 = arith.sitofp %6 : vector<8x16xi32> to vector<8x16xf32>
    %cst = arith.constant dense<0.000000e+00> : vector<8x32xf32>
    %8 = tpu.matmul %7, %1, %cst {dimension_numbers = #tpu.dot_dimension_numbers<[1], [0], [0], [1], [0, 0, 1, 1], [], []>} : vector<8x16xf32>, vector<16x32xf32>, vector<8x32xf32> -> vector<8x32xf32>
    %c0_3 = arith.constant 0 : index
    %c0_4 = arith.constant 0 : index
    %9 = vector.load %arg3[%c0_3, %c0_4] : memref<8x128xf32, #tpu.memory_space<vmem>>, vector<8x32xf32>
    tpu.vector_store %arg3[%c0_3, %c0_4], %8 {strides = array<i32>} : memref<8x128xf32, #tpu.memory_space<vmem>>, vector<8x32xf32>,
    %10 = vector.extract_strided_slice %0 {offsets = [0, 1], sizes = [8, 1], strides = [1, 1]} : vector<8x4xi32> to vector<8x1xi32>
    %11 = vector.broadcast %10 : vector<8x1xi32> to vector<8x16xi32>
    %12 = arith.cmpi eq, %11, %2 : vector<8x16xi32>
    %13 = arith.extui %12 : vector<8x16xi1> to vector<8x16xi32>
    %14 = arith.sitofp %13 : vector<8x16xi32> to vector<8x16xf32>
    %cst_5 = arith.constant dense<0.000000e+00> : vector<8x32xf32>
    %15 = tpu.matmul %14, %1, %cst_5 {dimension_numbers = #tpu.dot_dimension_numbers<[1], [0], [0], [1], [0, 0, 1, 1], [], []>} : vector<8x16xf32>, vector<16x32xf32>, vector<8x32xf32> -> vector<8x32xf32>
    %c0_6 = arith.constant 0 : index
    %c32 = arith.constant 32 : index
    %16 = vector.load %arg3[%c0_6, %c32] : memref<8x128xf32, #tpu.memory_space<vmem>>, vector<8x32xf32>
    tpu.vector_store %arg3[%c0_6, %c32], %15 {strides = array<i32>} : memref<8x128xf32, #tpu.memory_space<vmem>>, vector<8x32xf32>,
    %17 = vector.extract_strided_slice %0 {offsets = [0, 2], sizes = [8, 1], strides = [1, 1]} : vector<8x4xi32> to vector<8x1xi32>
    %18 = vector.broadcast %17 : vector<8x1xi32> to vector<8x16xi32>
    %19 = arith.cmpi eq, %18, %2 : vector<8x16xi32>
    %20 = arith.extui %19 : vector<8x16xi1> to vector<8x16xi32>
    %21 = arith.sitofp %20 : vector<8x16xi32> to vector<8x16xf32>
    %cst_7 = arith.constant dense<0.000000e+00> : vector<8x32xf32>
    %22 = tpu.matmul %21, %1, %cst_7 {dimension_numbers = #tpu.dot_dimension_numbers<[1], [0], [0], [1], [0, 0, 1, 1], [], []>} : vector<8x16xf32>, vector<16x32xf32>, vector<8x32xf32> -> vector<8x32xf32>
    %c0_8 = arith.constant 0 : index
    %c64 = arith.constant 64 : index
    %23 = vector.load %arg3[%c0_8, %c64] : memref<8x128xf32, #tpu.memory_space<vmem>>, vector<8x32xf32>
    tpu.vector_store %arg3[%c0_8, %c64], %22 {strides = array<i32>} : memref<8x128xf32, #tpu.memory_space<vmem>>, vector<8x32xf32>,
    %24 = vector.extract_strided_slice %0 {offsets = [0, 3], sizes = [8, 1], strides = [1, 1]} : vector<8x4xi32> to vector<8x1xi32>
    %25 = vector.broadcast %24 : vector<8x1xi32> to vector<8x16xi32>
    %26 = arith.cmpi eq, %25, %2 : vector<8x16xi32>
    %27 = arith.extui %26 : vector<8x16xi1> to vector<8x16xi32>
    %28 = arith.sitofp %27 : vector<8x16xi32> to vector<8x16xf32>
    %cst_9 = arith.constant dense<0.000000e+00> : vector<8x32xf32>
    %29 = tpu.matmul %28, %1, %cst_9 {dimension_numbers = #tpu.dot_dimension_numbers<[1], [0], [0], [1], [0, 0, 1, 1], [], []>} : vector<8x16xf32>, vector<16x32xf32>, vector<8x32xf32> -> vector<8x32xf32>
    %c0_10 = arith.constant 0 : index
    %c96 = arith.constant 96 : index
    %30 = vector.load %arg3[%c0_10, %c96] : memref<8x128xf32, #tpu.memory_space<vmem>>, vector<8x32xf32>
    tpu.vector_store %arg3[%c0_10, %c96], %29 {strides = array<i32>} : memref<8x128xf32, #tpu.memory_space<vmem>>, vector<8x32xf32>,
    return
  }
  func.func @transform_0(%arg0: i32) -> (i32, i32) {
    %c0_i32 = arith.constant 0 : i32
    %c0_i32_0 = arith.constant 0 : i32
    return %arg0, %c0_i32 : i32, i32
  }
  func.func @transform_1(%arg0: i32) -> (i32, i32) {
    %c0_i32 = arith.constant 0 : i32
    %c0_i32_0 = arith.constant 0 : i32
    %c0_i32_1 = arith.constant 0 : i32
    return %c0_i32, %c0_i32_0 : i32, i32
  }
  func.func @transform_2(%arg0: i32) -> (i32, i32) {
    %c0_i32 = arith.constant 0 : i32
    %c0_i32_0 = arith.constant 0 : i32
    return %arg0, %c0_i32 : i32, i32
  }
}

</mosaic_0001>

<bundles_post_ra>
// kernel: tpu_custom_call.1
= control target key start
LH: loop header
LB: loop body
LE: loop exit
PB: predicated region body
PF: predicated region fallthrough
CT: control target
= control target key end

     0   :  { %7 = vsyncpa [#allocation3], 0  ;;  %s538_s0 = inlined_call_operand.vmem [shape: s32[8,4], index: 0, kind: input, shape index: {}]   ;;  %s539_s1 = inlined_call_operand.hbm [shape: f32[16,32], index: 1, kind: input, shape index: {}]   ;;  %s540_s2 = inlined_call_operand.hbm [shape: f32[8,128], index: 2, kind: output, shape index: {}]  }
   0x1   :  { %8 = vsyncpa [#allocation4], 0  ;;  %s493_s9 = smov [#allocation2]  }
   0x2   :  { %s16_s10 = sshll.u32 %s493_s9, 4  ;;  %s17_s10 = int_to_ptr.vmem [resolvable:$true] %s16_s10 }
   0x3   :  { %s457_s11 = scalar_lea.vmem %s17_s10, 256  ;;  %p462_p1 = scmp.lt.s32.totalorder %s17_s10, %s17_s10 }
   0x4   :  { %p458_p0 = scmp.ne.s32.totalorder %s17_s10, %s457_s11  ;;  %p463_p2 = scmp.lt.s32.totalorder %s457_s11, %s457_s11 }
   0x6   :  { %p464_p3 = por %p463_p2, %p462_p1 }
   0x8   :  { %p465_p4 = pnand %p464_p3, %p458_p0 }
   0xa   :  { %468 = shalt.err (!%p465_p4)
}
   0xb   :  { %s494_s12 = smov 128   ;;  %s495_s13 = smov 8  }
   0xc   :  { %22 = dma.hbm_to_vmem [thread:$0]  %s539_s1, 256, %s17_s10, [#allocation3], %s494_s12, %s494_s12, %s495_s13  }
   0xd   :  { %489 = dma.done.wait [#allocation3], 256  }
   0xe   :  { %490 = vsyncadd [#allocation3], 4294967040  ;;  %v496_v0 = vmov 0   ;;  %v497_v1 = vmov 2   ;;  %v498_v2 = vmov 0.0   ;;  %vm499_vm0 = vmmov 0  }
   0xf   :  { %444 = vset.pattern.permute.xlu0 %v496_v0  ;;  %446 = vset.pattern.permute.xlu1 %v497_v1  ;;  %v26_v3 = vld [vmem:[%s538_s0] sm:$0xff]  ;;  %v28_v4 = vld [vmem:[#allocation2 + $0x8] sm:$0xff]  ;;  %v500_v6 = vmov 1   ;;  %v501_v7 = vmov 3   ;;  %v29_v8 = vlaneseq  ;;  %vm37_vm1 = vcmask 130048   ;;  %s502_s0 = smov 64  }
  0x10   :  { %403 = vmatprep.subr.mxu0 %v498_v2  ;;  %410 = vmatprep.subr.mxu1 %v498_v2  ;;  %v27_v5 = vld [vmem:[#allocation2] sm:$0xff]  ;;  %vm111_vm6 = vcmask 261120   ;;  %s503_s1 = smov 32   ;;  %s504_s18 = smov 96   ;;  %vm196_vm7 = vcmask 523520   ;;  %vm281_vm8 = vcmask 785920  }
  0x11   :  { %407 = vmatprep.mubr.msk.f32.mxu0 %vm499_vm0, %v498_v2  ;;  %414 = vmatprep.mubr.msk.f32.mxu1 %vm499_vm0, %v498_v2  ;;  %v30_v9 = vand.u32 127, %v29_v8  ;;  %s505_s19 = smov [#allocation5]   ;;  %vm366_vm9 = vcmask 1048320  }
  0x12   :  { %32 = vperm.xlu0 %444, %v26_v3   ;;  %199 = vperm.xlu1 %446, %v26_v3   ;;  %s374_s20 = sshll.u32 %s505_s19, 4  ;;  %s375_s20 = int_to_ptr.vmem [resolvable:$true] %s374_s20 }
  0x13   :  { %404 = vmatpush3.msra.mxu0 %v28_v4  ;;  %411 = vmatpush3.msra.mxu1 %v28_v4  ;;  %s469_s21 = scalar_lea.vmem %s375_s20, 128  ;;  %p474_p6 = scmp.lt.s32.totalorder %s375_s20, %s375_s20 }
  0x14   :  { %405 = vmatprep.subr.mxu0 %v498_v2  ;;  %412 = vmatprep.subr.mxu1 %v498_v2  ;;  %p470_p5 = scmp.ne.s32.totalorder %s375_s20, %s469_s21  ;;  %p475_p7 = scmp.lt.s32.totalorder %s469_s21, %s469_s21 }
  0x15   :  { %406 = vmatpush3.msra.mxu0 %v27_v5  ;;  %413 = vmatpush3.msra.mxu1 %v27_v5 }
  0x16   :  { %445 = vset.pattern.permute.xlu0 %v500_v6  ;;  %447 = vset.pattern.permute.xlu1 %v501_v7  ;;  %p476_p8 = por %p475_p7, %p474_p6 }
  0x17   :  { %114 = vperm.xlu0 %445, %v26_v3   ;;  %284 = vperm.xlu1 %447, %v26_v3  }
  0x18   :  { %417 = vmatprep.subr.mxu0 %v498_v2  ;;  %424 = vmatprep.subr.mxu1 %v498_v2  ;;  %p477_p9 = pnand %p476_p8, %p470_p5 }
  0x1b   :  { %448 = vset.pattern.permute.xlu0 %v501_v7 }
  0x8d   :  { %v33_v10 = vpop.permute.xlu0 %32  ;;  %v200_v11 = vpop.permute.xlu1 %199 }
  0x8e   :  { %vm34_vm2 = vcmp.eq.s32.totalorder %v33_v10, %v30_v9  ;;  %vm201_vm3 = vcmp.eq.s32.totalorder %v200_v11, %v30_v9 }
  0x8f   :  { %v383_v12 = vsel %vm34_vm2, 1.0, %v498_v2  ;;  %v387_v13 = vsel %vm201_vm3, 1.0, %v498_v2 }
  0x90   :  { %408 = vmatmul.mubr.msk.f32.vlgmr.msra.gmra.mxu0 %vm37_vm1, %v383_v12 }
  0x91   :  { %418 = vmatpush3.msra.mxu0 %v28_v4  ;;  %421 = vmatprep.mubr.msk.f32.mxu0 %vm499_vm0, %v498_v2 }
  0x92   :  { %419 = vmatprep.subr.mxu0 %v498_v2  ;;  %v115_v14 = vpop.permute.xlu0 %114  ;;  %v285_v15 = vpop.permute.xlu1 %284 }
  0x93   :  { %vm116_vm4 = vcmp.eq.s32.totalorder %v115_v14, %v30_v9  ;;  %420 = vmatpush3.msra.mxu0 %v27_v5  ;;  %vm286_vm5 = vcmp.eq.s32.totalorder %v285_v15, %v30_v9 }
  0x94   :  { %v385_v16 = vsel %vm116_vm4, 1.0, %v498_v2  ;;  %422 = vmatmul.mubr.msk.f32.vlgmr.msra.gmra.mxu0 %vm37_vm1, %v387_v13  ;;  %v389_v17 = vsel %vm286_vm5, 1.0, %v498_v2 }
  0x95   :  { %415 = vmatmul.mubr.msk.f32.vlgmr.msra.gmra.mxu1 %vm37_vm1, %v385_v16 }
  0x96   :  { %425 = vmatpush3.msra.mxu1 %v28_v4  ;;  %428 = vmatprep.mubr.msk.f32.mxu1 %vm499_vm0, %v498_v2 }
  0x97   :  { %426 = vmatprep.subr.mxu1 %v498_v2 }
  0x98   :  { %427 = vmatpush3.msra.mxu1 %v27_v5 }
  0x99   :  { %429 = vmatmul.mubr.msk.f32.vlgmr.msra.gmra.mxu1 %vm37_vm1, %v389_v17 }
 0x150   :  { %v107_v18 = vpop.f32.mrf.mxu0 }
 0x151   :  { %112 = vst.msk [vmem:[#allocation5] sm:$0xff] %vm111_vm6, %v107_v18 }
 0x152   :  { %v409_v19 = vpop.f32.mrf.mxu0 }
 0x154   :  { %v273_v20 = vpop.f32.mrf.mxu0 }
 0x155   :  { %278 = vrot.lane.b32.xlu0 %v273_v20, %s502_s0  ;;  %v188_v21 = vpop.f32.mrf.mxu1 }
 0x156   :  { %v423_v22 = vpop.f32.mrf.mxu0  ;;  %193 = vrot.lane.b32.xlu1 %v188_v21, %s503_s1 }
 0x157   :  { %v416_v23 = vpop.f32.mrf.mxu1 }
 0x159   :  { %v358_v24 = vpop.f32.mrf.mxu1 }
 0x15a   :  { %363 = vrot.lane.b32.xlu1 %v358_v24, %s504_s18 }
 0x15b   :  { %v430_v25 = vpop.f32.mrf.mxu1 }
 0x1c7   :  { %v279_v27 = vpop.permute.xlu0 %278 }
 0x1c8   :  { %v194_v26 = vpop.permute.xlu1 %193 }
 0x1c9   :  { %197 = vst.msk [vmem:[#allocation5] sm:$0xff] %vm196_vm7, %v194_v26 }
 0x1ca   :  { %282 = vst.msk [vmem:[#allocation5] sm:$0xff] %vm281_vm8, %v279_v27 }
 0x1cc   :  { %v364_v28 = vpop.permute.xlu1 %363 }
 0x1cd   :  { %367 = vst.msk [vmem:[#allocation5] sm:$0xff] %vm366_vm9, %v364_v28 }
 0x1ce   :  { %480 = shalt.err (!%p477_p9)
}
 0x1cf   :  { %377 = dma.vmem_to_hbm [thread:$0]  %s375_s20, 128, %s540_s2, [#allocation4]  }
 0x1d0   :  { %491 = dma.done.wait [#allocation4], 128  }
 0x1d1   :  { %492 = vsyncadd [#allocation4], 4294967168 }
 0x1d2   :  { %381 = vsyncpa [#allocation3], 1 }
 0x1d3   :  { %382 = vsyncpa [#allocation4], 1 }

</bundles_post_ra>
